<compile_context>
chip_gen: v7x
topology: tpu7x:2x2x1
jax: 0.10.0
libtpu: 0.0.40
codegen_flags: <defaults>
</compile_context>

<pallas_src>
import random

import numpy as np
import jax
import jax.numpy as jnp
from jax import lax
from jax.experimental import pallas as pl
from jax.experimental.pallas import tpu as pltpu

_LANES = 128
_BUTTERFLY_D = (1, 2, 4, 8, 16, 32)


# ---------------------------------------------------------------------------
# In-kernel 128-lane reversal helpers
# ---------------------------------------------------------------------------
def _rev128_butterfly(x, stage_masks):
    """Exact lane reversal (i -> 127 - i) of a (rows, 128) tile, XLU/VPU only."""
    y = x
    for d, keep in zip(_BUTTERFLY_D, stage_masks):
        fwd = pltpu.roll(y, shift=_LANES - d, axis=1)   # fwd[i] = y[(i + d) % 128]
        bwd = pltpu.roll(y, shift=d, axis=1)            # bwd[i] = y[(i - d) % 128]
        y = jnp.where(keep, fwd, bwd)                   # y[i]   = y_old[i ^ d]
    # Final stage d = 64: i ^ 64 == (i + 64) % 128 -> pure rotation, no select.
    return pltpu.roll(y, shift=64, axis=1)


def _rev128_mxu(x):
    """Exact lane reversal of a (rows, 128) bf16 tile via one MXU matmul."""
    q = lax.broadcasted_iota(jnp.int32, (_LANES, _LANES), 0)
    p = lax.broadcasted_iota(jnp.int32, (_LANES, _LANES), 1)
    rev = jnp.where(q + p == _LANES - 1, 1.0, 0.0).astype(x.dtype)
    # one-hot permutation: each output element = exactly one input value + 0s,
    # accumulated in f32 -> bit-exact for finite bf16 data.
    return jnp.dot(x, rev, preferred_element_type=jnp.float32).astype(x.dtype)


# ---------------------------------------------------------------------------
# Kernel builder
# ---------------------------------------------------------------------------
def _make_hflip_kernel(k, off, use_mxu):
    """Kernel over k output 128-lane sub-blocks.

    Inputs: k (lane-aligned W) or k+1 (ragged W) views of the same array, each
    a (tm, 128) block; output: one (tm, k*128) lane-dense block.
    """
    aligned = off == _LANES
    split = _LANES - off          # lanes [split, 128) of rev(bH) feed lanes < off

    def kernel(*refs):
        o_ref = refs[-1]
        in_refs = refs[:-1]
        lane = lax.broadcasted_iota(jnp.int32, (1, _LANES), 1)

        if use_mxu:
            rev = _rev128_mxu
        else:
            stage_masks = [(lane & d) == 0 for d in _BUTTERFLY_D]  # (1,128) each
            rev = lambda x: _rev128_butterfly(x, stage_masks)

        if aligned:
            # Output sub-block t is simply the lane-reversal of view t
            # (block mirroring is done entirely by the input index_maps).
            for t in range(k):
                o_ref[:, t * _LANES:(t + 1) * _LANES] = rev(in_refs[t][...])
        else:
            # Ragged W: reverse each of the k+1 views once, then each output
            # sub-block t = roll(select(rev(view t), rev(view t+1)), off).
            revs = []
            for t in range(k + 1):
                x = in_refs[t][...]
                if use_mxu and t == 0:
                    # Only view 0 at grid step j==0 holds the ragged last
                    # 128-block; zero its invalid lanes so 0 * <uninitialized
                    # NaN/Inf> cannot poison the one-hot matmul.
                    is_partial = pl.program_id(1) == 0
                    x = jnp.where(jnp.logical_and(is_partial, lane >= off),
                                  jnp.zeros_like(x), x)
                revs.append(rev(x))
            sel_hi = lane >= split                                  # (1,128)
            for t in range(k):
                z = jnp.where(sel_hi, revs[t], revs[t + 1])
                o_ref[:, t * _LANES:(t + 1) * _LANES] = pltpu.roll(
                    z, shift=off, axis=1)

    return kernel


# ---------------------------------------------------------------------------
# Wrappers
# ---------------------------------------------------------------------------
def _hflip_2d_pallas(x2):
    """Reverse the last axis of a (m, w) array, w >= 128, with no pad/slice."""
    m, w = x2.shape
    nb128 = pl.cdiv(w, _LANES)                 # number of 128-lane input blocks
    off = w - (nb128 - 1) * _LANES             # 1..128; 128 means lane-aligned
    aligned = off == _LANES
    k = min(4, w // _LANES)                    # output sub-blocks per kernel block
    bw = k * _LANES
    n_views = k if aligned else k + 1

    # Row tile scaled by dtype so one 128-wide sub-block is ~256 KiB
    # (output block ~1 MiB for k=4); total pipelined VMEM <= 4.5 MiB,
    # safely under the 16 MiB v5e default scoped limit (review #3).
    isz = jnp.dtype(x2.dtype).itemsize
    tm = {1: 2048, 2: 1024, 4: 512}.get(isz, 256)
    tm = min(tm, m)
    if tm < m:
        tm = max(8, (tm // 8) * 8)
    if m > 8 and pl.cdiv(m, tm) < 2:
        # v7x megacore: keep >= 2 blocks on the parallel row axis (review #6).
        tm = max(8, ((m // 2 + 7) // 8) * 8)

    grid = (pl.cdiv(m, tm), pl.cdiv(w, bw))

    # View t of the input holds the lane-aligned 128-block nb128-1-j*k-t,
    # i.e. the mirrored source of output 128-sub-block j*k+t (clamped to 0 for
    # the out-of-range reads that only feed masked-out output lanes).
    in_specs = [
        pl.BlockSpec(
            (tm, _LANES),
            lambda i, j, t=t: (i, jnp.maximum(nb128 - 1 - j * k - t, 0)))
        for t in range(n_views)
    ]
    out_spec = pl.BlockSpec((tm, bw), lambda i, j: (i, j))

    use_mxu = x2.dtype == jnp.bfloat16         # review #5 (see header note)
    kernel = _make_hflip_kernel(k, off, use_mxu)

    return pl.pallas_call(
        kernel,
        out_shape=jax.ShapeDtypeStruct((m, w), x2.dtype),
        grid=grid,
        in_specs=in_specs,
        out_specs=out_spec,
        compiler_params=pltpu.CompilerParams(
            dimension_semantics=("parallel", "parallel")),
    )(*([x2] * n_views))


@jax.jit
def hflip_last_axis(x):
    """Reverse the last axis of `x` with a Pallas TPU kernel (bit-exact)."""
    shape = x.shape
    w = shape[-1]
    if w < _LANES:
        # Rows narrower than one vreg: a Pallas launch is pure overhead.
        return jnp.flip(x, axis=-1)
    m = 1
    for s in shape[:-1]:
        m *= s
    out = _hflip_2d_pallas(x.reshape(m, w))
    return out.reshape(shape)


def bbox_hflip(bboxes, w):
    """bboxes[:, [0, 2]] = w - bboxes[:, [2, 0]]  (kept in plain XLA: 4 lanes)."""
    x0, y0, x1, y1 = bboxes[:, 0], bboxes[:, 1], bboxes[:, 2], bboxes[:, 3]
    return jnp.stack([w - x1, y0, w - x0, y1], axis=1).astype(bboxes.dtype)


def random_horizontal_flip(dc, p=0.5, rng=None):
    """Pallas port of RandomHorizontalFlip.forward.

    The Bernoulli(p) decision is a host-side Python coin flip, exactly like the
    PyTorch module (random.random()); no device->host sync is involved.
    """
    draw = rng.random() if rng is not None else random.random()
    dc = dict(dc)
    if draw < p:
        _, _, w = dc["image"].shape
        dc["image"] = hflip_last_axis(dc["image"])
        if "bboxes" in dc:
            dc["bboxes"] = bbox_hflip(dc["bboxes"], w)
        if "masks" in dc:
            dc["masks"] = hflip_last_axis(dc["masks"])
        if "label" in dc and dc["label"].ndim == 2:
            dc["label"] = hflip_last_axis(dc["label"])
    return dc


# ---------------------------------------------------------------------------
# Example / correctness check
# ---------------------------------------------------------------------------
if __name__ == "__main__":
    key = jax.random.PRNGKey(0)
    k_img, k_msk, k_box, k_lbl = jax.random.split(key, 4)

    # W = 160 is deliberately NOT a multiple of 128: exercises the ragged path
    # (no pad / no slice) inside the kernel.
    C, H, W = 3, 24, 160
    image = jax.random.normal(k_img, (C, H, W), dtype=jnp.float32)
    masks = (jax.random.uniform(k_msk, (2, H, W)) > 0.5).astype(jnp.float32)
    xy0 = jax.random.uniform(k_box, (5, 2)) * (W / 2)
    wh = jax.random.uniform(jax.random.fold_in(k_box, 1), (5, 2)) * (W / 2)
    bboxes = jnp.concatenate([xy0, xy0 + wh], axis=1).astype(jnp.float32)
    label = jax.random.randint(k_lbl, (H, W), 0, 21, dtype=jnp.int32)  # 2-D seg label

    dc = {"image": image, "masks": masks, "bboxes": bboxes, "label": label}

    # p=1.0 so the flip path (and hence the Pallas kernel) always executes here.
    out = random_horizontal_flip(dc, p=1.0)
    for v in out.values():
        jax.block_until_ready(v)

    # Reference semantics of the PyTorch module.
    ref_image = jnp.flip(image, axis=2)
    ref_masks = jnp.flip(masks, axis=2)
    ref_label = jnp.flip(label, axis=1)
    ref_bboxes = bboxes.at[:, jnp.array([0, 2])].set(W - bboxes[:, jnp.array([2, 0])])

    # The butterfly path is bit-exact -> exact equality.
    assert np.array_equal(np.asarray(out["image"]), np.asarray(ref_image))
    assert np.array_equal(np.asarray(out["masks"]), np.asarray(ref_masks))
    assert np.array_equal(np.asarray(out["label"]), np.asarray(ref_label))
    assert np.allclose(np.asarray(out["bboxes"]), np.asarray(ref_bboxes), atol=1e-5)

    # bf16 (MXU path), ragged W: exact for finite data.
    img_bf16 = image.astype(jnp.bfloat16)
    o = hflip_last_axis(img_bf16)
    jax.block_until_ready(o)
    assert np.array_equal(np.asarray(o), np.asarray(jnp.flip(img_bf16, axis=2)))

    # Lane-aligned W with k=4 (512-lane output blocks), f32 butterfly and bf16 MXU.
    a = jax.random.normal(jax.random.fold_in(key, 3), (2, 56, 512), dtype=jnp.float32)
    oa = hflip_last_axis(a)
    jax.block_until_ready(oa)
    assert np.array_equal(np.asarray(oa), np.asarray(jnp.flip(a, axis=2)))
    a16 = a.astype(jnp.bfloat16)
    oa16 = hflip_last_axis(a16)
    jax.block_until_ready(oa16)
    assert np.array_equal(np.asarray(oa16), np.asarray(jnp.flip(a16, axis=2)))

    # Ragged W with k=4 (5 input views, clamped last window) and multiple
    # row / W grid blocks.
    b = jax.random.normal(jax.random.fold_in(key, 7), (3, 200, 520), dtype=jnp.float32)
    ob = hflip_last_axis(b)
    jax.block_until_ready(ob)
    assert np.array_equal(np.asarray(ob), np.asarray(jnp.flip(b, axis=2)))

    # Tiny-width arrays take the documented XLA fallback (sub-vreg rows).
    tiny = jax.random.randint(jax.random.fold_in(key, 9), (4, 8), 0, 10, jnp.int32)
    ot = hflip_last_axis(tiny)
    jax.block_until_ready(ot)
    assert np.array_equal(np.asarray(ot), np.asarray(jnp.flip(tiny, axis=1)))

    print("KERNEL_OK")
</pallas_src>

<mosaic_0001>
module attributes {stable_mosaic.version = 11 : i64} {
  func.func @kernel(%arg0: i32, %arg1: i32, %arg2: memref<40x128xf32, #tpu.memory_space<vmem>>, %arg3: memref<40x128xf32, #tpu.memory_space<vmem>>, %arg4: memref<40x128xf32, #tpu.memory_space<vmem>>) attributes {dimension_semantics = [#tpu.dimension_semantics<parallel>, #tpu.dimension_semantics<parallel>], iteration_bounds = array<i64: 2, 2>, scalar_prefetch = 0 : i64, scratch_operands = 0 : i64, tpu.core_type = #tpu.core_type<tc>, window_params = [{transform_indices = @transform_0, window_bounds = array<i64: 40, 128>}, {transform_indices = @transform_1, window_bounds = array<i64: 40, 128>}, {transform_indices = @transform_2, window_bounds = array<i64: 40, 128>}]} {
    %0 = tpu.iota {dimensions = array<i32: 1>} : vector<1x128xi32>
    %c1_i32 = arith.constant 1 : i32
    %1 = vector.broadcast %c1_i32 : i32 to vector<1x128xi32>
    %2 = arith.andi %0, %1 : vector<1x128xi32>
    %c0_i32 = arith.constant 0 : i32
    %3 = vector.broadcast %c0_i32 : i32 to vector<1x128xi32>
    %4 = arith.cmpi eq, %2, %3 : vector<1x128xi32>
    %c2_i32 = arith.constant 2 : i32
    %5 = vector.broadcast %c2_i32 : i32 to vector<1x128xi32>
    %6 = arith.andi %0, %5 : vector<1x128xi32>
    %c0_i32_0 = arith.constant 0 : i32
    %7 = vector.broadcast %c0_i32_0 : i32 to vector<1x128xi32>
    %8 = arith.cmpi eq, %6, %7 : vector<1x128xi32>
    %c4_i32 = arith.constant 4 : i32
    %9 = vector.broadcast %c4_i32 : i32 to vector<1x128xi32>
    %10 = arith.andi %0, %9 : vector<1x128xi32>
    %c0_i32_1 = arith.constant 0 : i32
    %11 = vector.broadcast %c0_i32_1 : i32 to vector<1x128xi32>
    %12 = arith.cmpi eq, %10, %11 : vector<1x128xi32>
    %c8_i32 = arith.constant 8 : i32
    %13 = vector.broadcast %c8_i32 : i32 to vector<1x128xi32>
    %14 = arith.andi %0, %13 : vector<1x128xi32>
    %c0_i32_2 = arith.constant 0 : i32
    %15 = vector.broadcast %c0_i32_2 : i32 to vector<1x128xi32>
    %16 = arith.cmpi eq, %14, %15 : vector<1x128xi32>
    %c16_i32 = arith.constant 16 : i32
    %17 = vector.broadcast %c16_i32 : i32 to vector<1x128xi32>
    %18 = arith.andi %0, %17 : vector<1x128xi32>
    %c0_i32_3 = arith.constant 0 : i32
    %19 = vector.broadcast %c0_i32_3 : i32 to vector<1x128xi32>
    %20 = arith.cmpi eq, %18, %19 : vector<1x128xi32>
    %c32_i32 = arith.constant 32 : i32
    %21 = vector.broadcast %c32_i32 : i32 to vector<1x128xi32>
    %22 = arith.andi %0, %21 : vector<1x128xi32>
    %c0_i32_4 = arith.constant 0 : i32
    %23 = vector.broadcast %c0_i32_4 : i32 to vector<1x128xi32>
    %24 = arith.cmpi eq, %22, %23 : vector<1x128xi32>
    %c0 = arith.constant 0 : index
    %c0_5 = arith.constant 0 : index
    %25 = vector.load %arg2[%c0, %c0_5] : memref<40x128xf32, #tpu.memory_space<vmem>>, vector<40x128xf32>
    %c127_i32 = arith.constant 127 : i32
    %26 = tpu.dynamic_rotate %25 by %c127_i32 dim 1 : vector<40x128xf32>, i32 -> vector<40x128xf32>
    %c1_i32_6 = arith.constant 1 : i32
    %27 = tpu.dynamic_rotate %25 by %c1_i32_6 dim 1 : vector<40x128xf32>, i32 -> vector<40x128xf32>
    %28 = vector.shape_cast %4 : vector<1x128xi1> to vector<1x128xi1>
    %29 = vector.broadcast %28 : vector<1x128xi1> to vector<40x128xi1>
    %30 = arith.select %29, %26, %27 : vector<40x128xi1>, vector<40x128xf32>
    %c126_i32 = arith.constant 126 : i32
    %31 = tpu.dynamic_rotate %30 by %c126_i32 dim 1 : vector<40x128xf32>, i32 -> vector<40x128xf32>
    %c2_i32_7 = arith.constant 2 : i32
    %32 = tpu.dynamic_rotate %30 by %c2_i32_7 dim 1 : vector<40x128xf32>, i32 -> vector<40x128xf32>
    %33 = vector.shape_cast %8 : vector<1x128xi1> to vector<1x128xi1>
    %34 = vector.broadcast %33 : vector<1x128xi1> to vector<40x128xi1>
    %35 = arith.select %34, %31, %32 : vector<40x128xi1>, vector<40x128xf32>
    %c124_i32 = arith.constant 124 : i32
    %36 = tpu.dynamic_rotate %35 by %c124_i32 dim 1 : vector<40x128xf32>, i32 -> vector<40x128xf32>
    %c4_i32_8 = arith.constant 4 : i32
    %37 = tpu.dynamic_rotate %35 by %c4_i32_8 dim 1 : vector<40x128xf32>, i32 -> vector<40x128xf32>
    %38 = vector.shape_cast %12 : vector<1x128xi1> to vector<1x128xi1>
    %39 = vector.broadcast %38 : vector<1x128xi1> to vector<40x128xi1>
    %40 = arith.select %39, %36, %37 : vector<40x128xi1>, vector<40x128xf32>
    %c120_i32 = arith.constant 120 : i32
    %41 = tpu.dynamic_rotate %40 by %c120_i32 dim 1 : vector<40x128xf32>, i32 -> vector<40x128xf32>
    %c8_i32_9 = arith.constant 8 : i32
    %42 = tpu.dynamic_rotate %40 by %c8_i32_9 dim 1 : vector<40x128xf32>, i32 -> vector<40x128xf32>
    %43 = vector.shape_cast %16 : vector<1x128xi1> to vector<1x128xi1>
    %44 = vector.broadcast %43 : vector<1x128xi1> to vector<40x128xi1>
    %45 = arith.select %44, %41, %42 : vector<40x128xi1>, vector<40x128xf32>
    %c112_i32 = arith.constant 112 : i32
    %46 = tpu.dynamic_rotate %45 by %c112_i32 dim 1 : vector<40x128xf32>, i32 -> vector<40x128xf32>
    %c16_i32_10 = arith.constant 16 : i32
    %47 = tpu.dynamic_rotate %45 by %c16_i32_10 dim 1 : vector<40x128xf32>, i32 -> vector<40x128xf32>
    %48 = vector.shape_cast %20 : vector<1x128xi1> to vector<1x128xi1>
    %49 = vector.broadcast %48 : vector<1x128xi1> to vector<40x128xi1>
    %50 = arith.select %49, %46, %47 : vector<40x128xi1>, vector<40x128xf32>
    %c96_i32 = arith.constant 96 : i32
    %51 = tpu.dynamic_rotate %50 by %c96_i32 dim 1 : vector<40x128xf32>, i32 -> vector<40x128xf32>
    %c32_i32_11 = arith.constant 32 : i32
    %52 = tpu.dynamic_rotate %50 by %c32_i32_11 dim 1 : vector<40x128xf32>, i32 -> vector<40x128xf32>
    %53 = vector.shape_cast %24 : vector<1x128xi1> to vector<1x128xi1>
    %54 = vector.broadcast %53 : vector<1x128xi1> to vector<40x128xi1>
    %55 = arith.select %54, %51, %52 : vector<40x128xi1>, vector<40x128xf32>
    %c64_i32 = arith.constant 64 : i32
    %56 = tpu.dynamic_rotate %55 by %c64_i32 dim 1 : vector<40x128xf32>, i32 -> vector<40x128xf32>
    %c0_12 = arith.constant 0 : index
    %c0_13 = arith.constant 0 : index
    %57 = vector.load %arg3[%c0_12, %c0_13] : memref<40x128xf32, #tpu.memory_space<vmem>>, vector<40x128xf32>
    %c127_i32_14 = arith.constant 127 : i32
    %58 = tpu.dynamic_rotate %57 by %c127_i32_14 dim 1 : vector<40x128xf32>, i32 -> vector<40x128xf32>
    %c1_i32_15 = arith.constant 1 : i32
    %59 = tpu.dynamic_rotate %57 by %c1_i32_15 dim 1 : vector<40x128xf32>, i32 -> vector<40x128xf32>
    %60 = vector.shape_cast %4 : vector<1x128xi1> to vector<1x128xi1>
    %61 = vector.broadcast %60 : vector<1x128xi1> to vector<40x128xi1>
    %62 = arith.select %61, %58, %59 : vector<40x128xi1>, vector<40x128xf32>
    %c126_i32_16 = arith.constant 126 : i32
    %63 = tpu.dynamic_rotate %62 by %c126_i32_16 dim 1 : vector<40x128xf32>, i32 -> vector<40x128xf32>
    %c2_i32_17 = arith.constant 2 : i32
    %64 = tpu.dynamic_rotate %62 by %c2_i32_17 dim 1 : vector<40x128xf32>, i32 -> vector<40x128xf32>
    %65 = vector.shape_cast %8 : vector<1x128xi1> to vector<1x128xi1>
    %66 = vector.broadcast %65 : vector<1x128xi1> to vector<40x128xi1>
    %67 = arith.select %66, %63, %64 : vector<40x128xi1>, vector<40x128xf32>
    %c124_i32_18 = arith.constant 124 : i32
    %68 = tpu.dynamic_rotate %67 by %c124_i32_18 dim 1 : vector<40x128xf32>, i32 -> vector<40x128xf32>
    %c4_i32_19 = arith.constant 4 : i32
    %69 = tpu.dynamic_rotate %67 by %c4_i32_19 dim 1 : vector<40x128xf32>, i32 -> vector<40x128xf32>
    %70 = vector.shape_cast %12 : vector<1x128xi1> to vector<1x128xi1>
    %71 = vector.broadcast %70 : vector<1x128xi1> to vector<40x128xi1>
    %72 = arith.select %71, %68, %69 : vector<40x128xi1>, vector<40x128xf32>
    %c120_i32_20 = arith.constant 120 : i32
    %73 = tpu.dynamic_rotate %72 by %c120_i32_20 dim 1 : vector<40x128xf32>, i32 -> vector<40x128xf32>
    %c8_i32_21 = arith.constant 8 : i32
    %74 = tpu.dynamic_rotate %72 by %c8_i32_21 dim 1 : vector<40x128xf32>, i32 -> vector<40x128xf32>
    %75 = vector.shape_cast %16 : vector<1x128xi1> to vector<1x128xi1>
    %76 = vector.broadcast %75 : vector<1x128xi1> to vector<40x128xi1>
    %77 = arith.select %76, %73, %74 : vector<40x128xi1>, vector<40x128xf32>
    %c112_i32_22 = arith.constant 112 : i32
    %78 = tpu.dynamic_rotate %77 by %c112_i32_22 dim 1 : vector<40x128xf32>, i32 -> vector<40x128xf32>
    %c16_i32_23 = arith.constant 16 : i32
    %79 = tpu.dynamic_rotate %77 by %c16_i32_23 dim 1 : vector<40x128xf32>, i32 -> vector<40x128xf32>
    %80 = vector.shape_cast %20 : vector<1x128xi1> to vector<1x128xi1>
    %81 = vector.broadcast %80 : vector<1x128xi1> to vector<40x128xi1>
    %82 = arith.select %81, %78, %79 : vector<40x128xi1>, vector<40x128xf32>
    %c96_i32_24 = arith.constant 96 : i32
    %83 = tpu.dynamic_rotate %82 by %c96_i32_24 dim 1 : vector<40x128xf32>, i32 -> vector<40x128xf32>
    %c32_i32_25 = arith.constant 32 : i32
    %84 = tpu.dynamic_rotate %82 by %c32_i32_25 dim 1 : vector<40x128xf32>, i32 -> vector<40x128xf32>
    %85 = vector.shape_cast %24 : vector<1x128xi1> to vector<1x128xi1>
    %86 = vector.broadcast %85 : vector<1x128xi1> to vector<40x128xi1>
    %87 = arith.select %86, %83, %84 : vector<40x128xi1>, vector<40x128xf32>
    %c64_i32_26 = arith.constant 64 : i32
    %88 = tpu.dynamic_rotate %87 by %c64_i32_26 dim 1 : vector<40x128xf32>, i32 -> vector<40x128xf32>
    %c96_i32_27 = arith.constant 96 : i32
    %89 = vector.broadcast %c96_i32_27 : i32 to vector<1x128xi32>
    %90 = arith.cmpi sge, %0, %89 : vector<1x128xi32>
    %91 = vector.shape_cast %90 : vector<1x128xi1> to vector<1x128xi1>
    %92 = vector.broadcast %91 : vector<1x128xi1> to vector<40x128xi1>
    %93 = arith.select %92, %56, %88 : vector<40x128xi1>, vector<40x128xf32>
    %c32_i32_28 = arith.constant 32 : i32
    %94 = tpu.dynamic_rotate %93 by %c32_i32_28 dim 1 : vector<40x128xf32>, i32 -> vector<40x128xf32>
    %c0_29 = arith.constant 0 : index
    %c0_30 = arith.constant 0 : index
    %95 = vector.load %arg4[%c0_29, %c0_30] : memref<40x128xf32, #tpu.memory_space<vmem>>, vector<40x128xf32>
    tpu.vector_store %arg4[%c0_29, %c0_30], %94 {strides = array<i32>} : memref<40x128xf32, #tpu.memory_space<vmem>>, vector<40x128xf32>,
    return
  }
  func.func @transform_0(%arg0: i32, %arg1: i32) -> (i32, i32) {
    %c1_i32 = arith.constant 1 : i32
    %0 = arith.muli %arg1, %c1_i32 : i32
    %c1_i32_0 = arith.constant 1 : i32
    %1 = arith.subi %c1_i32_0, %0 : i32
    %c0_i32 = arith.constant 0 : i32
    %2 = arith.subi %1, %c0_i32 : i32
    %c0_i32_1 = arith.constant 0 : i32
    %3 = arith.maxsi %2, %c0_i32_1 : i32
    %c0_i32_2 = arith.constant 0 : i32
    return %arg0, %3 : i32, i32
  }
  func.func @transform_1(%arg0: i32, %arg1: i32) -> (i32, i32) {
    %c1_i32 = arith.constant 1 : i32
    %0 = arith.muli %arg1, %c1_i32 : i32
    %c1_i32_0 = arith.constant 1 : i32
    %1 = arith.subi %c1_i32_0, %0 : i32
    %c1_i32_1 = arith.constant 1 : i32
    %2 = arith.subi %1, %c1_i32_1 : i32
    %c0_i32 = arith.constant 0 : i32
    %3 = arith.maxsi %2, %c0_i32 : i32
    %c0_i32_2 = arith.constant 0 : i32
    return %arg0, %3 : i32, i32
  }
  func.func @transform_2(%arg0: i32, %arg1: i32) -> (i32, i32) {
    %c0_i32 = arith.constant 0 : i32
    return %arg0, %arg1 : i32, i32
  }
}

</mosaic_0001>

<bundles_post_ra>
// kernel: hflip_last_axis.1
= control target key start
LH: loop header
LB: loop body
LE: loop exit
PB: predicated region body
PF: predicated region fallthrough
CT: control target
= control target key end

     0   :  { %s1791_s0 = inlined_call_operand.hbm [shape: f32[72,160], index: 0, kind: input, shape index: {}, may-alias: {0,1}]   ;;  %s1792_s1 = inlined_call_operand.hbm [shape: f32[72,160], index: 1, kind: input, shape index: {}, may-alias: {0,1}]   ;;  %s1793_s2 = inlined_call_operand.hbm [shape: f32[72,160], index: 2, kind: output, shape index: {}]  }
   0x1   :  { %1799 = sst [smem:[#allocation18_spill]] %s1791_s0 }
   0x2   :  { %7 = vsyncpa [#allocation3], 0 }
   0x3   :  { %9 = vsyncpa [#allocation3 + $0x1], 0 }
   0x4   :  { %10 = vsyncpa [#allocation6], 0 }
   0x5   :  { %12 = vsyncpa [#allocation6 + $0x1], 0 }
   0x6   :  { %13 = vsyncpa [#allocation4], 0 }
   0x7   :  { %15 = vsyncpa [#allocation4 + $0x1], 0  ;;  %s1213_s9 = smov 0   ;;  %s1215_s10 = smov 0  }
   0x8   :  { %s1217_s11 = smov 0   ;;  %s1219_s12 = smov 0  }
   0x9   :  { %s1221_s13 = smov 0   ;;  %s1223_s14 = smov 0  }
   0xa   :  { %s1225_s15 = smov 0   ;;  %s1227_s16 = smov 0  }
   0xb   :  { %s1229_s17 = smov 0   ;;  %s1231_s18 = smov 0  }
   0xc   :  { %s1233_s19 = smov 0   ;;  %s1235_s20 = smov 0  }
   0xd   :  { %s1237_s21 = smov 0   ;;  %s1239_s22 = smov 0  }
   0xe LB: > { %1800 = sst [smem:[#allocation11_spill]] %s1151_s17  ;;  %s789_s23 = sadd.s32 4294967295, %s1171_s22   ;;  %s1171_s22 = sphi %s1239_s22, %s21_s22   ;;  %s1167_s21 = sphi %s1237_s21, %s1847_s21   ;;  %s1163_s20 = sphi %s1235_s20, %s1836_s20   ;;  %s1159_s19 = sphi %s1233_s19, %s1846_s19   ;;  %s1155_s18 = sphi %s1231_s18, %s1835_s18   ;;  %s1151_s17 = sphi %s1229_s17, %s1834_s17   ;;  %s1147_s16 = sphi %s1227_s16, %s1845_s16   ;;  %s1143_s15 = sphi %s1225_s15, %s1844_s15   ;;  %s1139_s14 = sphi %s1223_s14, %s1843_s14   ;;  %s1135_s13 = sphi %s1221_s13, %s1842_s13   ;;  %s1131_s12 = sphi %s1219_s12, %s1841_s12   ;;  %s1127_s11 = sphi %s1217_s11, %s1840_s11   ;;  %s1123_s10 = sphi %s1215_s10, %s1839_s10   ;;  %s1119_s9 = sphi %s1213_s9, %s1838_s9  }
   0xf   : > { %1801 = sst [smem:[#allocation12_spill]] %s1163_s20  ;;  %s30_s25 = sadd.s32 1, %s1163_s20 }
  0x10   : > { %s33_s26 = sadd.s32 1, %s1167_s21  ;;  %p31_p0 = scmp.ge.s32.totalorder %s30_s25, 2 }
  0x11   : > { %s37_s27 = ssub.s32 1, %s1163_s20  ;;  %s48_s28 = sadd.s32 1, %s1151_s17 }
  0x12   : > { %p38_p1 = scmp.gt.s32.totalorder %s37_s27, 0  ;;  %s1849_s25 = smov (%p31_p0, %s30_s25), 0 }
  0x13   : > { %1802 = sst [smem:[#allocation13_spill]] %s1849_s25  ;;  %s1851_s26 = smov (!%p31_p0, %s33_s26), %s1167_s21 }
  0x14   : > { %s1853_s27 = smov (!%p38_p1, %s37_s27), 0  ;;  %p35_p2 = scmp.ge.s32.totalorder %s1851_s26, 2 }
  0x15   : > { %s40_s29 = ssub.s32 1, %s1849_s25  ;;  %p55_p4 = scmp.ne.s32.totalorder %s1151_s17, %s1147_s16 }
  0x16   : > { %p41_p3 = scmp.gt.s32.totalorder %s40_s29, 0  ;;  %s1855_s26 = smov (%p35_p2, %s1851_s26), 0 }
  0x17   : > { %1803 = sst [smem:[#allocation14_spill]] %s1855_s26  ;;  %s43_s30 = ssub.s32 %s1167_s21, %s1855_s26 }
  0x18   : > { %s1857_s29 = smov (!%p41_p3, %s40_s29), 0  ;;  %p56_p5 = scmp.eq.s32.totalorder %s1171_s22, 0 }
  0x19   : > { %s44_s3 = ssub.s32 %s1853_s27, %s1857_s29  ;;  %p61_p6 = scmp.ne.s32.totalorder %s1147_s16, %s1143_s15 }
  0x1a   : > { %s45_s4 = sor.u32 %s44_s3, %s43_s30  ;;  %p1307_p7 = por %p56_p5, %p55_p4 }
  0x1b   : > { %p46_p8 = scmp.eq.s32.totalorder %s45_s4, 0  ;;  %p62_p9 = scmp.eq.s32.totalorder %s789_s23, 0 }
  0x1c   : > { %s82_s8 = sadd.s32 1, %s1139_s14  ;;  %p89_p11 = scmp.ne.s32.totalorder %s1139_s14, %s1135_s13 }
  0x1d   : > { %s1314_s6 = scalar_select %p46_p8, %s1151_s17, %s48_s28  }
  0x1e   : > { %p1316_p10 = por %p62_p9, %p61_p6  ;;  %p95_p12 = scmp.ne.s32.totalorder %s1135_s13, %s1131_s12 }
  0x1f   : > { %1805 = sst [smem:[#allocation15_spill]] %s1314_s6  ;;  %s106_s15 = ssub.s32 %s1163_s20, %s1849_s25 }
  0x20   : > { %p1329_p13 = por %p89_p11, %p56_p5  ;;  %p80_p0 = scmp.eq.s32.totalorder %s43_s30, 0 }
  0x21   : > { %p1333_p1 = por %p95_p12, %p62_p9  ;;  %s107_s28 = sor.u32 %s106_s15, %s43_s30 }
  0x22   : > { %s110_s4 = sadd.s32 1, %s1127_s11  ;;  %p108_p2 = scmp.eq.s32.totalorder %s107_s28, 0 }
  0x23   : > { %s1808_s3 = scalar_select %p1333_p1, 1, 0 }
  0x24   : > { %s1339_s24 = scalar_select %p80_p0, %s1139_s14, %s82_s8  }
  0x25   : > { %p120_p3 = scmp.ne.s32.totalorder %s1127_s11, %s1123_s10  ;;  %p121_p4 = scmp.eq.s32.totalorder %s789_s23, 3 }
  0x26   : > { %1809 = sst [smem:[#allocation16_spill]] %s1339_s24  ;;  %p126_p6 = scmp.ne.s32.totalorder %s1123_s10, %s1119_s9 }
  0x27   : > { %s1348_s12 = scalar_select %p108_p2, %s1127_s11, %s110_s4  }
  0x28   : > { %p1350_p5 = por %p121_p4, %p120_p3  ;;  %s1812_s25 = sadd.s32 4294967294, %s1171_s22  }
  0x29   : > { %1810 = sst [smem:[#allocation17_spill]] %s1348_s12  ;;  %p127_p8 = scmp.eq.s32.totalorder %s1812_s25, 3 }
  0x2a   : > { %s1811_s26 = scalar_select %p1350_p5, 1, 0 }
  0x2b   : > { %p1356_p9 = por %p127_p8, %p126_p6  ;;  %p792_p11 = scmp.ge.s32.totalorder %s1171_s22, 4 }
  0x2d   : > { %s1813_s20 = scalar_select %p1356_p9, 1, 0 }
  0x2e   : > { %143 = sbr.rel (%p792_p11) target bundleno = 131 (0x83), region = 16 }
  0x35   : > { %146 = sbr.rel (!%p1307_p7) target bundleno = 94 (0x5e), region = 20  ;;  %s147_s23 = sand.u32 (%p1307_p7), 1, %s1151_s17  }
  0x36   : > { %s155_s30 = smul.u32 (%p1307_p7), 5, %s1167_s21  ;;  %s1368_s4 = scalar_lea.sflag (%p1307_p7), [#allocation3], %s147_s23 }
  0x37   : > { %s817_s8 = smul.u32 (%p1307_p7), 40, %s147_s23 }
  0x38   : > { %s156_s15 = ssub.s32 (%p1307_p7), 9, %s155_s30 }
  0x39   : > { %p157_p12 = scmp.lt.s32.totalorder (%p1307_p7), %s156_s15, 5  ;;  %s151_s6 = scalar_lea.vmem (%p1307_p7), [#allocation2], %s817_s8 }
  0x3c   : > { %s1859_s15 = smov (!%p157_p12, %s156_s15), 5 }
  0x3d   : > { %s1365_s28 = sshll.u32 %s1859_s15, 7 }
  0x3e   : > { %s161_s25 = ssub.s32 640, %s1365_s28 }
  0x3f   : > { %162 = vsyncadd %s1368_s4, %s161_s25  ;;  %p794_p7 = scmp.ne.s32.totalorder %s1365_s28, 0  ;;  %s814_s5 = smul.u32 10, %s1167_s21 }
  0x40   : > { %s169_s17 = sshll.u32 %s151_s6, 4  ;;  %s1814_s0 = sld [smem:[#allocation18_spill]]  ;;  %s1374_s17 = int_to_ptr.vmem [resolvable:$true] %s169_s17 }
  0x41   : > { %s165_s30 = sadd.s32 %s814_s5, %s1853_s27 }
  0x42   : > { %s796_s15 = sshll.u32 %s165_s30, 7 }
  0x46   : > { %s1379_s23 = scalar_lea.hbm %s1814_s0, %s796_s15  ;;  %s968_s27 = scalar_lea.hbm %s1814_s0, 2304 }
  0x47   : > { %s964_s8 = scalar_lea.hbm %s1379_s23, %s1365_s28  ;;  %p969_p4 = scmp.lt.u32.totalorder %s1379_s23, %s1814_s0 }
  0x48   : > { %p965_p0 = scmp.ne.s32.totalorder %s1379_s23, %s964_s8  ;;  %p970_p6 = scmp.lt.u32.totalorder %s968_s27, %s964_s8 }
  0x49   : > { %p972_p11 = scmp.lt.u32.totalorder %s964_s8, %s1379_s23 }
  0x4a   : > { %p966_p2 = pnand %p965_p0, %p794_p7  ;;  %p971_p8 = por %p970_p6, %p969_p4 }
  0x4c   : > { %p967_p3 = pneg %p966_p2  ;;  %p973_p12 = por %p972_p11, %p971_p8 }
  0x4e   : > { %p974_p9 = pnand %p973_p12, %p967_p3 }
  0x50   : > { %977 = shalt.err (!%p974_p9)
}
  0x51   : > { %s978_s24 = scalar_lea.vmem %s1374_s17, %s1365_s28  ;;  %s1173_s12 = smov [#allocation2]  }
  0x52   : > { %p979_p0 = scmp.ne.s32.totalorder %s1374_s17, %s978_s24  ;;  %s982_s15 = sshll.u32 %s1173_s12, 4  ;;  %s983_s15 = int_to_ptr.vmem [resolvable:$false] %s982_s15 }
  0x53   : > { %s984_s25 = scalar_lea.vmem %s983_s15, 1280  ;;  %p985_p1 = scmp.lt.s32.totalorder %s1374_s17, %s983_s15 }
  0x54   : > { %p980_p2 = pnand %p979_p0, %p794_p7  ;;  %p986_p4 = scmp.lt.s32.totalorder %s984_s25, %s978_s24 }
  0x56   : > { %p981_p5 = pneg %p980_p2  ;;  %p987_p6 = por %p986_p4, %p985_p1 }
  0x58   : > { %p988_p8 = pnand %p987_p6, %p981_p5 }
  0x5a   : > { %991 = shalt.err (!%p988_p8)
}
  0x5b   : > { %s1174_s8 = smov 256   ;;  %s1175_s6 = smov 128  }
  0x5c   : > { %s1176_s27 = smov 8  }
  0x5d   : > { %175 = dma.hbm_to_vmem [thread:$0]  (%p794_p7), %s1379_s23, %s1365_s28, %s1374_s17, %s1368_s4, %s1174_s8, %s1175_s6, %s1176_s27  }
  0x5e PF: > { %178 = sbr.rel (!%p1329_p13) target bundleno = 131 (0x83), region = 24  ;;  %s179_s5 = sand.u32 (%p1329_p13), 1, %s1139_s14  }
  0x5f   : > { %s187_s30 = smul.u32 (%p1329_p13), 5, %s1167_s21  ;;  %s1413_s0 = scalar_lea.sflag (%p1329_p13), [#allocation6], %s179_s5 }
  0x60   : > { %s818_s24 = smul.u32 (%p1329_p13), 40, %s179_s5 }
  0x61   : > { %s188_s12 = ssub.s32 (%p1329_p13), 9, %s187_s30 }
  0x62   : > { %p189_p1 = scmp.lt.s32.totalorder (%p1329_p13), %s188_s12, 5  ;;  %s183_s17 = scalar_lea.vmem (%p1329_p13), [#allocation5], %s818_s24 }
  0x65   : > { %s1861_s12 = smov (!%p189_p1, %s188_s12), 5 }
  0x66   : > { %s1410_s15 = sshll.u32 %s1861_s12, 7 }
  0x67   : > { %s193_s25 = ssub.s32 640, %s1410_s15 }
  0x68   : > { %194 = vsyncadd %s1413_s0, %s193_s25  ;;  %p800_p13 = scmp.ne.s32.totalorder %s1410_s15, 0  ;;  %s201_s29 = sshll.u32 %s183_s17, 4  ;;  %s1417_s29 = int_to_ptr.vmem [resolvable:$true] %s201_s29 }
  0x69   : > { %s1116_s28 = smul.u32 1280, %s1167_s21  ;;  %s996_s30 = scalar_lea.hbm %s1792_s1, 2304 }
  0x6b   : > { %s1423_s8 = scalar_lea.hbm %s1792_s1, %s1116_s28 }
  0x6c   : > { %s992_s6 = scalar_lea.hbm %s1423_s8, %s1410_s15  ;;  %p997_p3 = scmp.lt.u32.totalorder %s1423_s8, %s1792_s1 }
  0x6d   : > { %p993_p5 = scmp.ne.s32.totalorder %s1423_s8, %s992_s6  ;;  %p998_p11 = scmp.lt.u32.totalorder %s996_s30, %s992_s6 }
  0x6e   : > { %p1000_p0 = scmp.lt.u32.totalorder %s992_s6, %s1423_s8 }
  0x6f   : > { %p994_p9 = pnand %p993_p5, %p800_p13  ;;  %p999_p12 = por %p998_p11, %p997_p3 }
  0x71   : > { %p995_p7 = pneg %p994_p9  ;;  %p1001_p2 = por %p1000_p0, %p999_p12 }
  0x73   : > { %p1002_p4 = pnand %p1001_p2, %p995_p7 }
  0x75   : > { %1005 = shalt.err (!%p1002_p4)
}
  0x76   : > { %s1006_s25 = scalar_lea.vmem %s1417_s29, %s1410_s15  ;;  %s1177_s17 = smov [#allocation5]  }
  0x77   : > { %p1007_p6 = scmp.ne.s32.totalorder %s1417_s29, %s1006_s25  ;;  %s1010_s28 = sshll.u32 %s1177_s17, 4  ;;  %s1011_s28 = int_to_ptr.vmem [resolvable:$false] %s1010_s28 }
  0x78   : > { %s1012_s4 = scalar_lea.vmem %s1011_s28, 1280  ;;  %p1013_p5 = scmp.lt.s32.totalorder %s1417_s29, %s1011_s28 }
  0x79   : > { %p1008_p8 = pnand %p1007_p6, %p800_p13  ;;  %p1014_p9 = scmp.lt.s32.totalorder %s1012_s4, %s1006_s25 }
  0x7b   : > { %p1009_p1 = pneg %p1008_p8  ;;  %p1015_p3 = por %p1014_p9, %p1013_p5 }
  0x7d   : > { %p1016_p11 = pnand %p1015_p3, %p1009_p1 }
  0x7f   : > { %1019 = shalt.err (!%p1016_p11)
}
  0x80   : > { %s1178_s23 = smov 256   ;;  %s1179_s6 = smov 128  }
  0x81   : > { %s1180_s27 = smov 8  }
  0x82   : > { %207 = dma.hbm_to_vmem [thread:$0]  (%p800_p13), %s1423_s8, %s1410_s15, %s1417_s29, %s1413_s0, %s1178_s23, %s1179_s6, %s1180_s27  }
  0x83 PF: > { %p805_p7 = scmp.ge.s32.totalorder %s1171_s22, 1  ;;  %p209_p12 = scmp.lt.s32.totalorder %s1171_s22, 5 }
  0x85   : > { %p210_p0 = pnand %p805_p7, %p209_p12 }
  0x86   : > { %s215_s5 = sand.u32 (!%p210_p0), 1, %s1147_s16  }
  0x87   : > { %213 = sbr.rel (%p210_p0) target bundleno = 1195 (0x4ab), region = 28  ;;  %s216_s24 = scalar_lea.sflag (!%p210_p0), [#allocation3], %s215_s5 }
  0x88   : > { %s819_s30 = smul.u32 (!%p210_p0), 40, %s215_s5 }
  0x8a   : > { %s219_s12 = scalar_lea.vmem (!%p210_p0), [#allocation2], %s819_s30 }
  0x8e   : > { %1105 = dma.done.wait (%p1316_p10), %s216_s24, 640  }
  0x8f   : > { %1107 = vsyncadd (%p1316_p10), %s216_s24, 4294966656  ;;  %s224_s0 = sand.u32 1, %s1135_s13   ;;  %p1815_p13 = scmp.ne.s32.totalorder %s1808_s3, 0 }
  0x90   : > { %s820_s15 = smul.u32 40, %s224_s0  ;;  %s225_s29 = scalar_lea.sflag [#allocation6], %s224_s0 }
  0x92   : > { %s228_s8 = scalar_lea.vmem [#allocation5], %s820_s15 }
  0x93   : > { %1109 = dma.done.wait (%p1815_p13), %s225_s29, 640  }
  0x94   : > { %1111 = vsyncadd (%p1815_p13), %s225_s29, 4294966656  ;;  %v291_v0 = vld [vmem:[%s219_s12 + $0x10] sm:$0xff]  ;;  %v289_v1 = vld [vmem:[%s219_s12] sm:$0xff]  ;;  %s1181_s25 = smov 127   ;;  %s1182_s7 = smov 1   ;;  %v275_v10 = vlaneseq }
  0x95   : > { %298 = vrot.lane.b32.xlu1 %v291_v0, %s1181_s25  ;;  %294 = vrot.lane.b32.xlu0 %v289_v1, %s1181_s25  ;;  %v292_v2 = vld [vmem:[%s219_s12 + $0x18] sm:$0xff]  ;;  %v290_v3 = vld [vmem:[%s219_s12 + $0x8] sm:$0xff]  ;;  %s1183_s3 = smov 126   ;;  %s1184_s17 = smov 2  }
  0x96   : > { %v293_v4 = vld [vmem:[%s219_s12 + $0x20] sm:$0xff]  ;;  %v467_v5 = vld [vmem:[%s228_s8 + $0x8] sm:$0xff]  ;;  %v466_v6 = vld [vmem:[%s228_s8] sm:$0xff]  ;;  %v1462_v11 = vand.u32 127, %v275_v10  ;;  %s1185_s28 = smov 124   ;;  %s1186_s4 = smov 4  }
  0x97   : > { %v469_v7 = vld [vmem:[%s228_s8 + $0x18] sm:$0xff]  ;;  %v468_v8 = vld [vmem:[%s228_s8 + $0x10] sm:$0xff]  ;;  %v470_v9 = vld [vmem:[%s228_s8 + $0x20] sm:$0xff]  ;;  %s1187_s23 = smov 120   ;;  %s1188_s6 = smov 8  }
  0x98   : > { %v277_v14 = vand.u32 1, %v1462_v11  ;;  %v279_v47 = vand.u32 2, %v1462_v11  ;;  %s1189_s27 = smov 112   ;;  %s1190_s5 = smov 16   ;;  %vm631_vm6 = vcmp.ge.s32.totalorder %v1462_v11, 96 }
  0x99   : > { %300 = vrot.lane.b32.xlu1 %v292_v2, %s1181_s25  ;;  %296 = vrot.lane.b32.xlu0 %v290_v3, %s1181_s25  ;;  %s1191_s30 = smov 96   ;;  %s1192_s24 = smov 32  }
  0x9a   : > { %vm1465_vm0 = vcmp.eq.s32.totalorder %v277_v14, 0  ;;  %vm1500_vm1 = vcmp.eq.s32.totalorder %v279_v47, 0  ;;  %s1193_s12 = smov 64   ;;  %s251_s0 = sand.u32 1, %s1123_s10  }
  0x9b   : > { %s821_s15 = smul.u32 40, %s251_s0  ;;  %s1695_s8 = scalar_lea.sflag [#allocation4], %s251_s0 }
  0x9c   : > { %p1828_p10 = scmp.ne.s32.totalorder %s1811_s26, 0 }
  0x9d   : > { %304 = vrot.lane.b32.xlu1 %v289_v1, %s1182_s7  ;;  %302 = vrot.lane.b32.xlu0 %v293_v4, %s1181_s25  ;;  %s253_s29 = scalar_lea.vmem [#allocation7], %s821_s15 }
  0xa1   : > { %308 = vrot.lane.b32.xlu1 %v291_v0, %s1182_s7  ;;  %306 = vrot.lane.b32.xlu0 %v290_v3, %s1182_s7 }
  0xa5   : > { %312 = vrot.lane.b32.xlu1 %v293_v4, %s1182_s7  ;;  %310 = vrot.lane.b32.xlu0 %v292_v2, %s1182_s7 }
  0xa9   : > { %473 = vrot.lane.b32.xlu1 %v467_v5, %s1181_s25  ;;  %471 = vrot.lane.b32.xlu0 %v466_v6, %s1181_s25 }
  0xad   : > { %477 = vrot.lane.b32.xlu1 %v469_v7, %s1181_s25  ;;  %475 = vrot.lane.b32.xlu0 %v468_v8, %s1181_s25 }
  0xb1   : > { %481 = vrot.lane.b32.xlu1 %v466_v6, %s1182_s7  ;;  %479 = vrot.lane.b32.xlu0 %v470_v9, %s1181_s25  ;;  %s662_s25 = smul.u32 (%p1828_p10), 5, %s1159_s19 }
  0xb5   : > { %485 = vrot.lane.b32.xlu1 %v468_v8, %s1182_s7  ;;  %483 = vrot.lane.b32.xlu0 %v467_v5, %s1182_s7 }
  0xb9   : > { %489 = vrot.lane.b32.xlu1 %v470_v9, %s1182_s7  ;;  %487 = vrot.lane.b32.xlu0 %v469_v7, %s1182_s7  ;;  %s663_s7 = ssub.s32 (%p1828_p10), 9, %s662_s25 }
  0xba   : > { %p664_p2 = scmp.lt.s32.totalorder (%p1828_p10), %s663_s7, 5 }
 0x107   : > { %v299_v12 = vpop.permute.xlu1 %298  ;;  %v295_v13 = vpop.permute.xlu0 %294 }
 0x10b   : > { %v301_v15 = vpop.permute.xlu1 %300  ;;  %v297_v16 = vpop.permute.xlu0 %296 }
 0x10f   : > { %v305_v18 = vpop.permute.xlu1 %304  ;;  %v303_v19 = vpop.permute.xlu0 %302 }
 0x110   : > { %v316_v20 = vsel %vm1465_vm0, %v295_v13, %v305_v18 }
 0x111   : > { %321 = vrot.lane.b32.xlu0 %v316_v20, %s1183_s3 }
 0x113   : > { %v309_v21 = vpop.permute.xlu1 %308  ;;  %v307_v22 = vpop.permute.xlu0 %306 }
 0x114   : > { %v318_v23 = vsel %vm1465_vm0, %v299_v12, %v309_v21  ;;  %v317_v24 = vsel %vm1465_vm0, %v297_v16, %v307_v22 }
 0x115   : > { %325 = vrot.lane.b32.xlu0 %v318_v23, %s1183_s3  ;;  %323 = vrot.lane.b32.xlu1 %v317_v24, %s1183_s3 }
 0x117   : > { %v313_v25 = vpop.permute.xlu1 %312  ;;  %v311_v26 = vpop.permute.xlu0 %310 }
 0x118   : > { %v320_v27 = vsel %vm1465_vm0, %v303_v19, %v313_v25  ;;  %v319_v28 = vsel %vm1465_vm0, %v301_v15, %v311_v26  ;;  %v281_v15 = vand.u32 4, %v1462_v11 }
 0x119   : > { %329 = vrot.lane.b32.xlu0 %v320_v27, %s1183_s3  ;;  %327 = vrot.lane.b32.xlu1 %v319_v28, %s1183_s3 }
 0x11a   : > { %vm1535_vm2 = vcmp.eq.s32.totalorder %v281_v15, 0 }
 0x11b   : > { %v474_v29 = vpop.permute.xlu1 %473  ;;  %v472_v30 = vpop.permute.xlu0 %471 }
 0x11d   : > { %333 = vrot.lane.b32.xlu0 %v317_v24, %s1184_s17  ;;  %331 = vrot.lane.b32.xlu1 %v316_v20, %s1184_s17 }
 0x11f   : > { %v478_v31 = vpop.permute.xlu1 %477  ;;  %v476_v32 = vpop.permute.xlu0 %475 }
 0x121   : > { %337 = vrot.lane.b32.xlu0 %v319_v28, %s1184_s17  ;;  %335 = vrot.lane.b32.xlu1 %v318_v23, %s1184_s17 }
 0x123   : > { %v482_v33 = vpop.permute.xlu1 %481  ;;  %v480_v34 = vpop.permute.xlu0 %479 }
 0x124   : > { %v491_v35 = vsel %vm1465_vm0, %v472_v30, %v482_v33 }
 0x125   : > { %339 = vrot.lane.b32.xlu1 %v320_v27, %s1184_s17  ;;  %496 = vrot.lane.b32.xlu0 %v491_v35, %s1183_s3 }
 0x127   : > { %v486_v36 = vpop.permute.xlu1 %485  ;;  %v484_v37 = vpop.permute.xlu0 %483 }
 0x128   : > { %v493_v38 = vsel %vm1465_vm0, %v476_v32, %v486_v36  ;;  %v492_v39 = vsel %vm1465_vm0, %v474_v29, %v484_v37 }
 0x129   : > { %500 = vrot.lane.b32.xlu0 %v493_v38, %s1183_s3  ;;  %498 = vrot.lane.b32.xlu1 %v492_v39, %s1183_s3 }
 0x12b   : > { %v490_v40 = vpop.permute.xlu1 %489  ;;  %v488_v41 = vpop.permute.xlu0 %487 }
 0x12c   : > { %v495_v42 = vsel %vm1465_vm0, %v480_v34, %v490_v40  ;;  %v494_v43 = vsel %vm1465_vm0, %v478_v31, %v488_v41 }
 0x12d   : > { %504 = vrot.lane.b32.xlu0 %v495_v42, %s1183_s3  ;;  %502 = vrot.lane.b32.xlu1 %v494_v43, %s1183_s3 }
 0x131   : > { %508 = vrot.lane.b32.xlu0 %v492_v39, %s1184_s17  ;;  %506 = vrot.lane.b32.xlu1 %v491_v35, %s1184_s17 }
 0x135   : > { %512 = vrot.lane.b32.xlu0 %v494_v43, %s1184_s17  ;;  %510 = vrot.lane.b32.xlu1 %v493_v38, %s1184_s17 }
 0x139   : > { %514 = vrot.lane.b32.xlu1 %v495_v42, %s1184_s17 }
 0x183   : > { %v322_v44 = vpop.permute.xlu0 %321 }
 0x187   : > { %v324_v45 = vpop.permute.xlu1 %323  ;;  %v326_v46 = vpop.permute.xlu0 %325 }
 0x18b   : > { %v328_v48 = vpop.permute.xlu1 %327  ;;  %v330_v49 = vpop.permute.xlu0 %329 }
 0x18f   : > { %v332_v51 = vpop.permute.xlu1 %331  ;;  %v334_v52 = vpop.permute.xlu0 %333 }
 0x190   : > { %v343_v53 = vsel %vm1500_vm1, %v322_v44, %v332_v51  ;;  %v344_v54 = vsel %vm1500_vm1, %v324_v45, %v334_v52 }
 0x191   : > { %348 = vrot.lane.b32.xlu0 %v343_v53, %s1185_s28  ;;  %350 = vrot.lane.b32.xlu1 %v344_v54, %s1185_s28 }
 0x193   : > { %v336_v55 = vpop.permute.xlu1 %335  ;;  %v338_v56 = vpop.permute.xlu0 %337 }
 0x194   : > { %v345_v57 = vsel %vm1500_vm1, %v326_v46, %v336_v55  ;;  %v346_v58 = vsel %vm1500_vm1, %v328_v48, %v338_v56  ;;  %v283_v48 = vand.u32 8, %v1462_v11 }
 0x195   : > { %352 = vrot.lane.b32.xlu0 %v345_v57, %s1185_s28  ;;  %354 = vrot.lane.b32.xlu1 %v346_v58, %s1185_s28 }
 0x196   : > { %vm1570_vm3 = vcmp.eq.s32.totalorder %v283_v48, 0 }
 0x197   : > { %v340_v59 = vpop.permute.xlu1 %339  ;;  %v497_v60 = vpop.permute.xlu0 %496 }
 0x198   : > { %v347_v61 = vsel %vm1500_vm1, %v330_v49, %v340_v59 }
 0x199   : > { %356 = vrot.lane.b32.xlu0 %v347_v61, %s1185_s28  ;;  %358 = vrot.lane.b32.xlu1 %v343_v53, %s1186_s4 }
 0x19b   : > { %v499_v62 = vpop.permute.xlu1 %498  ;;  %v501_v63 = vpop.permute.xlu0 %500 }
 0x19d   : > { %360 = vrot.lane.b32.xlu0 %v344_v54, %s1186_s4  ;;  %362 = vrot.lane.b32.xlu1 %v345_v57, %s1186_s4 }
 0x19f   : > { %v503_v0 = vpop.permute.xlu1 %502  ;;  %v505_v1 = vpop.permute.xlu0 %504 }
 0x1a1   : > { %364 = vrot.lane.b32.xlu0 %v346_v58, %s1186_s4  ;;  %366 = vrot.lane.b32.xlu1 %v347_v61, %s1186_s4 }
 0x1a3   : > { %v507_v2 = vpop.permute.xlu1 %506  ;;  %v509_v3 = vpop.permute.xlu0 %508 }
 0x1a4   : > { %v516_v4 = vsel %vm1500_vm1, %v497_v60, %v507_v2  ;;  %v517_v5 = vsel %vm1500_vm1, %v499_v62, %v509_v3 }
 0x1a5   : > { %521 = vrot.lane.b32.xlu0 %v516_v4, %s1185_s28  ;;  %523 = vrot.lane.b32.xlu1 %v517_v5, %s1185_s28 }
 0x1a7   : > { %v511_v6 = vpop.permute.xlu1 %510  ;;  %v513_v7 = vpop.permute.xlu0 %512 }
 0x1a8   : > { %v518_v8 = vsel %vm1500_vm1, %v501_v63, %v511_v6  ;;  %v519_v9 = vsel %vm1500_vm1, %v503_v0, %v513_v7 }
 0x1a9   : > { %525 = vrot.lane.b32.xlu0 %v518_v8, %s1185_s28  ;;  %527 = vrot.lane.b32.xlu1 %v519_v9, %s1185_s28 }
 0x1ab   : > { %v515_v10 = vpop.permute.xlu1 %514 }
 0x1ac   : > { %v520_v12 = vsel %vm1500_vm1, %v505_v1, %v515_v10 }
 0x1ad   : > { %529 = vrot.lane.b32.xlu0 %v520_v12, %s1185_s28  ;;  %531 = vrot.lane.b32.xlu1 %v516_v4, %s1186_s4 }
 0x1b1   : > { %533 = vrot.lane.b32.xlu0 %v517_v5, %s1186_s4  ;;  %535 = vrot.lane.b32.xlu1 %v518_v8, %s1186_s4 }
 0x1b5   : > { %537 = vrot.lane.b32.xlu0 %v519_v9, %s1186_s4  ;;  %539 = vrot.lane.b32.xlu1 %v520_v12, %s1186_s4 }
 0x203   : > { %v351_v13 = vpop.permute.xlu1 %350  ;;  %v349_v14 = vpop.permute.xlu0 %348 }
 0x207   : > { %v355_v16 = vpop.permute.xlu1 %354  ;;  %v353_v17 = vpop.permute.xlu0 %352 }
 0x20b   : > { %v359_v19 = vpop.permute.xlu1 %358  ;;  %v357_v20 = vpop.permute.xlu0 %356 }
 0x20c   : > { %v370_v21 = vsel %vm1535_vm2, %v349_v14, %v359_v19 }
 0x20d   : > { %375 = vrot.lane.b32.xlu0 %v370_v21, %s1187_s23 }
 0x20f   : > { %v363_v22 = vpop.permute.xlu1 %362  ;;  %v361_v23 = vpop.permute.xlu0 %360 }
 0x210   : > { %v372_v24 = vsel %vm1535_vm2, %v353_v17, %v363_v22  ;;  %v371_v25 = vsel %vm1535_vm2, %v351_v13, %v361_v23 }
 0x211   : > { %379 = vrot.lane.b32.xlu0 %v372_v24, %s1187_s23  ;;  %377 = vrot.lane.b32.xlu1 %v371_v25, %s1187_s23 }
 0x213   : > { %v367_v26 = vpop.permute.xlu1 %366  ;;  %v365_v27 = vpop.permute.xlu0 %364 }
 0x214   : > { %v374_v28 = vsel %vm1535_vm2, %v357_v20, %v367_v26  ;;  %v373_v29 = vsel %vm1535_vm2, %v355_v16, %v365_v27  ;;  %v285_v16 = vand.u32 16, %v1462_v11 }
 0x215   : > { %383 = vrot.lane.b32.xlu0 %v374_v28, %s1187_s23  ;;  %381 = vrot.lane.b32.xlu1 %v373_v29, %s1187_s23 }
 0x216   : > { %vm1605_vm4 = vcmp.eq.s32.totalorder %v285_v16, 0 }
 0x217   : > { %v524_v30 = vpop.permute.xlu1 %523  ;;  %v522_v31 = vpop.permute.xlu0 %521 }
 0x219   : > { %387 = vrot.lane.b32.xlu0 %v371_v25, %s1188_s6  ;;  %385 = vrot.lane.b32.xlu1 %v370_v21, %s1188_s6 }
 0x21b   : > { %v528_v32 = vpop.permute.xlu1 %527  ;;  %v526_v33 = vpop.permute.xlu0 %525 }
 0x21d   : > { %391 = vrot.lane.b32.xlu0 %v373_v29, %s1188_s6  ;;  %389 = vrot.lane.b32.xlu1 %v372_v24, %s1188_s6 }
 0x21f   : > { %v532_v34 = vpop.permute.xlu1 %531  ;;  %v530_v35 = vpop.permute.xlu0 %529 }
 0x220   : > { %v541_v36 = vsel %vm1535_vm2, %v522_v31, %v532_v34 }
 0x221   : > { %393 = vrot.lane.b32.xlu1 %v374_v28, %s1188_s6  ;;  %546 = vrot.lane.b32.xlu0 %v541_v36, %s1187_s23 }
 0x223   : > { %v536_v37 = vpop.permute.xlu1 %535  ;;  %v534_v38 = vpop.permute.xlu0 %533 }
 0x224   : > { %v543_v39 = vsel %vm1535_vm2, %v526_v33, %v536_v37  ;;  %v542_v40 = vsel %vm1535_vm2, %v524_v30, %v534_v38 }
 0x225   : > { %550 = vrot.lane.b32.xlu0 %v543_v39, %s1187_s23  ;;  %548 = vrot.lane.b32.xlu1 %v542_v40, %s1187_s23 }
 0x227   : > { %v540_v41 = vpop.permute.xlu1 %539  ;;  %v538_v42 = vpop.permute.xlu0 %537 }
 0x228   : > { %v545_v43 = vsel %vm1535_vm2, %v530_v35, %v540_v41  ;;  %v544_v44 = vsel %vm1535_vm2, %v528_v32, %v538_v42 }
 0x229   : > { %554 = vrot.lane.b32.xlu0 %v545_v43, %s1187_s23  ;;  %552 = vrot.lane.b32.xlu1 %v544_v44, %s1187_s23 }
 0x22d   : > { %558 = vrot.lane.b32.xlu0 %v542_v40, %s1188_s6  ;;  %556 = vrot.lane.b32.xlu1 %v541_v36, %s1188_s6 }
 0x231   : > { %562 = vrot.lane.b32.xlu0 %v544_v44, %s1188_s6  ;;  %560 = vrot.lane.b32.xlu1 %v543_v39, %s1188_s6 }
 0x235   : > { %564 = vrot.lane.b32.xlu1 %v545_v43, %s1188_s6 }
 0x27f   : > { %v376_v45 = vpop.permute.xlu0 %375 }
 0x283   : > { %v378_v46 = vpop.permute.xlu1 %377  ;;  %v380_v47 = vpop.permute.xlu0 %379 }
 0x287   : > { %v382_v49 = vpop.permute.xlu1 %381  ;;  %v384_v50 = vpop.permute.xlu0 %383 }
 0x28b   : > { %v386_v52 = vpop.permute.xlu1 %385  ;;  %v388_v53 = vpop.permute.xlu0 %387 }
 0x28c   : > { %v397_v54 = vsel %vm1570_vm3, %v376_v45, %v386_v52  ;;  %v398_v55 = vsel %vm1570_vm3, %v378_v46, %v388_v53 }
 0x28d   : > { %402 = vrot.lane.b32.xlu0 %v397_v54, %s1189_s27  ;;  %404 = vrot.lane.b32.xlu1 %v398_v55, %s1189_s27 }
 0x28f   : > { %v390_v56 = vpop.permute.xlu1 %389  ;;  %v392_v57 = vpop.permute.xlu0 %391 }
 0x290   : > { %v399_v58 = vsel %vm1570_vm3, %v380_v47, %v390_v56  ;;  %v400_v59 = vsel %vm1570_vm3, %v382_v49, %v392_v57  ;;  %v287_v49 = vand.u32 32, %v1462_v11 }
 0x291   : > { %406 = vrot.lane.b32.xlu0 %v399_v58, %s1189_s27  ;;  %408 = vrot.lane.b32.xlu1 %v400_v59, %s1189_s27 }
 0x292   : > { %vm1650_vm5 = vcmp.eq.s32.totalorder %v287_v49, 0 }
 0x293   : > { %v394_v60 = vpop.permute.xlu1 %393  ;;  %v547_v61 = vpop.permute.xlu0 %546 }
 0x294   : > { %v401_v62 = vsel %vm1570_vm3, %v384_v50, %v394_v60 }
 0x295   : > { %410 = vrot.lane.b32.xlu0 %v401_v62, %s1189_s27  ;;  %412 = vrot.lane.b32.xlu1 %v397_v54, %s1190_s5 }
 0x297   : > { %v549_v63 = vpop.permute.xlu1 %548  ;;  %v551_v0 = vpop.permute.xlu0 %550 }
 0x299   : > { %414 = vrot.lane.b32.xlu0 %v398_v55, %s1190_s5  ;;  %416 = vrot.lane.b32.xlu1 %v399_v58, %s1190_s5 }
 0x29b   : > { %v553_v1 = vpop.permute.xlu1 %552  ;;  %v555_v2 = vpop.permute.xlu0 %554 }
 0x29d   : > { %418 = vrot.lane.b32.xlu0 %v400_v59, %s1190_s5  ;;  %420 = vrot.lane.b32.xlu1 %v401_v62, %s1190_s5 }
 0x29f   : > { %v557_v3 = vpop.permute.xlu1 %556  ;;  %v559_v4 = vpop.permute.xlu0 %558 }
 0x2a0   : > { %v566_v5 = vsel %vm1570_vm3, %v547_v61, %v557_v3  ;;  %v567_v6 = vsel %vm1570_vm3, %v549_v63, %v559_v4 }
 0x2a1   : > { %571 = vrot.lane.b32.xlu0 %v566_v5, %s1189_s27  ;;  %573 = vrot.lane.b32.xlu1 %v567_v6, %s1189_s27 }
 0x2a3   : > { %v561_v7 = vpop.permute.xlu1 %560  ;;  %v563_v8 = vpop.permute.xlu0 %562 }
 0x2a4   : > { %v568_v9 = vsel %vm1570_vm3, %v551_v0, %v561_v7  ;;  %v569_v10 = vsel %vm1570_vm3, %v553_v1, %v563_v8 }
 0x2a5   : > { %575 = vrot.lane.b32.xlu0 %v568_v9, %s1189_s27  ;;  %577 = vrot.lane.b32.xlu1 %v569_v10, %s1189_s27 }
 0x2a7   : > { %v565_v12 = vpop.permute.xlu1 %564 }
 0x2a8   : > { %v570_v13 = vsel %vm1570_vm3, %v555_v2, %v565_v12 }
 0x2a9   : > { %579 = vrot.lane.b32.xlu0 %v570_v13, %s1189_s27  ;;  %581 = vrot.lane.b32.xlu1 %v566_v5, %s1190_s5 }
 0x2ad   : > { %583 = vrot.lane.b32.xlu0 %v567_v6, %s1190_s5  ;;  %585 = vrot.lane.b32.xlu1 %v568_v9, %s1190_s5 }
 0x2b1   : > { %587 = vrot.lane.b32.xlu0 %v569_v10, %s1190_s5  ;;  %589 = vrot.lane.b32.xlu1 %v570_v13, %s1190_s5 }
 0x2ff   : > { %v405_v14 = vpop.permute.xlu1 %404  ;;  %v403_v15 = vpop.permute.xlu0 %402 }
 0x303   : > { %v409_v17 = vpop.permute.xlu1 %408  ;;  %v407_v18 = vpop.permute.xlu0 %406 }
 0x307   : > { %v413_v20 = vpop.permute.xlu1 %412  ;;  %v411_v21 = vpop.permute.xlu0 %410 }
 0x308   : > { %v424_v22 = vsel %vm1605_vm4, %v403_v15, %v413_v20 }
 0x309   : > { %429 = vrot.lane.b32.xlu0 %v424_v22, %s1191_s30 }
 0x30b   : > { %v417_v23 = vpop.permute.xlu1 %416  ;;  %v415_v24 = vpop.permute.xlu0 %414 }
 0x30c   : > { %v426_v25 = vsel %vm1605_vm4, %v407_v18, %v417_v23  ;;  %v425_v26 = vsel %vm1605_vm4, %v405_v14, %v415_v24 }
 0x30d   : > { %433 = vrot.lane.b32.xlu0 %v426_v25, %s1191_s30  ;;  %431 = vrot.lane.b32.xlu1 %v425_v26, %s1191_s30 }
 0x30f   : > { %v421_v27 = vpop.permute.xlu1 %420  ;;  %v419_v28 = vpop.permute.xlu0 %418 }
 0x310   : > { %v428_v29 = vsel %vm1605_vm4, %v411_v21, %v421_v27  ;;  %v427_v30 = vsel %vm1605_vm4, %v409_v17, %v419_v28 }
 0x311   : > { %437 = vrot.lane.b32.xlu0 %v428_v29, %s1191_s30  ;;  %435 = vrot.lane.b32.xlu1 %v427_v30, %s1191_s30 }
 0x313   : > { %v574_v31 = vpop.permute.xlu1 %573  ;;  %v572_v32 = vpop.permute.xlu0 %571 }
 0x315   : > { %441 = vrot.lane.b32.xlu0 %v425_v26, %s1192_s24  ;;  %439 = vrot.lane.b32.xlu1 %v424_v22, %s1192_s24 }
 0x317   : > { %v578_v33 = vpop.permute.xlu1 %577  ;;  %v576_v34 = vpop.permute.xlu0 %575 }
 0x319   : > { %445 = vrot.lane.b32.xlu0 %v427_v30, %s1192_s24  ;;  %443 = vrot.lane.b32.xlu1 %v426_v25, %s1192_s24 }
 0x31b   : > { %v582_v35 = vpop.permute.xlu1 %581  ;;  %v580_v36 = vpop.permute.xlu0 %579 }
 0x31c   : > { %v591_v37 = vsel %vm1605_vm4, %v572_v32, %v582_v35 }
 0x31d   : > { %447 = vrot.lane.b32.xlu1 %v428_v29, %s1192_s24  ;;  %596 = vrot.lane.b32.xlu0 %v591_v37, %s1191_s30 }
 0x31f   : > { %v586_v38 = vpop.permute.xlu1 %585  ;;  %v584_v39 = vpop.permute.xlu0 %583 }
 0x320   : > { %v593_v40 = vsel %vm1605_vm4, %v576_v34, %v586_v38  ;;  %v592_v41 = vsel %vm1605_vm4, %v574_v31, %v584_v39 }
 0x321   : > { %600 = vrot.lane.b32.xlu0 %v593_v40, %s1191_s30  ;;  %598 = vrot.lane.b32.xlu1 %v592_v41, %s1191_s30 }
 0x323   : > { %v590_v42 = vpop.permute.xlu1 %589  ;;  %v588_v43 = vpop.permute.xlu0 %587 }
 0x324   : > { %v595_v44 = vsel %vm1605_vm4, %v580_v36, %v590_v42  ;;  %v594_v45 = vsel %vm1605_vm4, %v578_v33, %v588_v43 }
 0x325   : > { %604 = vrot.lane.b32.xlu0 %v595_v44, %s1191_s30  ;;  %602 = vrot.lane.b32.xlu1 %v594_v45, %s1191_s30 }
 0x329   : > { %608 = vrot.lane.b32.xlu0 %v592_v41, %s1192_s24  ;;  %606 = vrot.lane.b32.xlu1 %v591_v37, %s1192_s24 }
 0x32d   : > { %612 = vrot.lane.b32.xlu0 %v594_v45, %s1192_s24  ;;  %610 = vrot.lane.b32.xlu1 %v593_v40, %s1192_s24 }
 0x331   : > { %614 = vrot.lane.b32.xlu1 %v595_v44, %s1192_s24 }
 0x37b   : > { %v430_v46 = vpop.permute.xlu0 %429 }
 0x37f   : > { %v432_v47 = vpop.permute.xlu1 %431  ;;  %v434_v48 = vpop.permute.xlu0 %433 }
 0x383   : > { %v436_v50 = vpop.permute.xlu1 %435  ;;  %v438_v51 = vpop.permute.xlu0 %437 }
 0x387   : > { %v440_v53 = vpop.permute.xlu1 %439  ;;  %v442_v54 = vpop.permute.xlu0 %441 }
 0x388   : > { %v451_v55 = vsel %vm1650_vm5, %v430_v46, %v440_v53  ;;  %v452_v56 = vsel %vm1650_vm5, %v432_v47, %v442_v54 }
 0x389   : > { %456 = vrot.lane.b32.xlu0 %v451_v55, %s1193_s12  ;;  %458 = vrot.lane.b32.xlu1 %v452_v56, %s1193_s12 }
 0x38b   : > { %v444_v57 = vpop.permute.xlu1 %443  ;;  %v446_v58 = vpop.permute.xlu0 %445 }
 0x38c   : > { %v453_v59 = vsel %vm1650_vm5, %v434_v48, %v444_v57  ;;  %v454_v60 = vsel %vm1650_vm5, %v436_v50, %v446_v58 }
 0x38d   : > { %460 = vrot.lane.b32.xlu0 %v453_v59, %s1193_s12  ;;  %462 = vrot.lane.b32.xlu1 %v454_v60, %s1193_s12 }
 0x38f   : > { %v448_v61 = vpop.permute.xlu1 %447  ;;  %v597_v62 = vpop.permute.xlu0 %596 }
 0x390   : > { %v455_v63 = vsel %vm1650_vm5, %v438_v51, %v448_v61 }
 0x391   : > { %464 = vrot.lane.b32.xlu0 %v455_v63, %s1193_s12 }
 0x393   : > { %v599_v0 = vpop.permute.xlu1 %598  ;;  %v601_v1 = vpop.permute.xlu0 %600 }
 0x397   : > { %v603_v2 = vpop.permute.xlu1 %602  ;;  %v605_v3 = vpop.permute.xlu0 %604 }
 0x39b   : > { %v607_v4 = vpop.permute.xlu1 %606  ;;  %v609_v5 = vpop.permute.xlu0 %608 }
 0x39c   : > { %v616_v6 = vsel %vm1650_vm5, %v597_v62, %v607_v4  ;;  %v617_v7 = vsel %vm1650_vm5, %v599_v0, %v609_v5 }
 0x39d   : > { %621 = vrot.lane.b32.xlu1 %v616_v6, %s1193_s12  ;;  %623 = vrot.lane.b32.xlu0 %v617_v7, %s1193_s12 }
 0x39f   : > { %v611_v8 = vpop.permute.xlu1 %610  ;;  %v613_v9 = vpop.permute.xlu0 %612 }
 0x3a0   : > { %v618_v10 = vsel %vm1650_vm5, %v601_v1, %v611_v8  ;;  %v619_v12 = vsel %vm1650_vm5, %v603_v2, %v613_v9 }
 0x3a1   : > { %625 = vrot.lane.b32.xlu1 %v618_v10, %s1193_s12  ;;  %627 = vrot.lane.b32.xlu0 %v619_v12, %s1193_s12 }
 0x3a3   : > { %v615_v13 = vpop.permute.xlu1 %614 }
 0x3a4   : > { %v620_v14 = vsel %vm1650_vm5, %v605_v3, %v615_v13 }
 0x3a5   : > { %629 = vrot.lane.b32.xlu1 %v620_v14, %s1193_s12 }
 0x3fb   : > { %v457_v15 = vpop.permute.xlu0 %456  ;;  %v459_v16 = vpop.permute.xlu1 %458 }
 0x3ff   : > { %v461_v17 = vpop.permute.xlu0 %460  ;;  %v463_v18 = vpop.permute.xlu1 %462 }
 0x403   : > { %v465_v19 = vpop.permute.xlu0 %464 }
 0x40f   : > { %v622_v20 = vpop.permute.xlu1 %621  ;;  %v624_v21 = vpop.permute.xlu0 %623 }
 0x410   : > { %v634_v22 = vsel %vm631_vm6, %v457_v15, %v622_v20  ;;  %v635_v23 = vsel %vm631_vm6, %v459_v16, %v624_v21 }
 0x411   : > { %639 = vrot.lane.b32.xlu0 %v634_v22, %s1192_s24  ;;  %641 = vrot.lane.b32.xlu1 %v635_v23, %s1192_s24 }
 0x413   : > { %v626_v24 = vpop.permute.xlu1 %625  ;;  %v628_v25 = vpop.permute.xlu0 %627 }
 0x414   : > { %v636_v26 = vsel %vm631_vm6, %v461_v17, %v626_v24  ;;  %v637_v27 = vsel %vm631_vm6, %v463_v18, %v628_v25 }
 0x415   : > { %643 = vrot.lane.b32.xlu0 %v636_v26, %s1192_s24  ;;  %645 = vrot.lane.b32.xlu1 %v637_v27, %s1192_s24 }
 0x417   : > { %v630_v28 = vpop.permute.xlu1 %629 }
 0x418   : > { %v638_v11 = vsel %vm631_vm6, %v465_v19, %v630_v28 }
 0x419   : > { %647 = vrot.lane.b32.xlu0 %v638_v11, %s1192_s24 }
 0x483   : > { %v642_v29 = vpop.permute.xlu1 %641  ;;  %v640_v30 = vpop.permute.xlu0 %639 }
 0x484   : > { %650 = vst [vmem:[%s253_s29 + $0x8] sm:$0xff] %v642_v29  ;;  %649 = vst [vmem:[%s253_s29] sm:$0xff] %v640_v30 }
 0x486   : > { %661 = sbr.rel (!%p1828_p10) target bundleno = 1195 (0x4ab), region = 40 }
 0x487   : > { %v646_v31 = vpop.permute.xlu1 %645  ;;  %v644_v32 = vpop.permute.xlu0 %643 }
 0x488   : > { %652 = vst [vmem:[%s253_s29 + $0x18] sm:$0xff] %v646_v31  ;;  %651 = vst [vmem:[%s253_s29 + $0x10] sm:$0xff] %v644_v32 }
 0x48b   : > { %v648_v33 = vpop.permute.xlu0 %647 }
 0x48c   : > { %653 = vst [vmem:[%s253_s29 + $0x20] sm:$0xff] %v648_v33 }
 0x48d   : > { %s1863_s7 = smov (!%p664_p2, %s663_s7), 5 }
 0x48e   : > { %s1700_s3 = sshll.u32 %s1863_s7, 7 }
 0x48f   : > { %s668_s17 = ssub.s32 640, %s1700_s3 }
 0x490   : > { %669 = vsyncadd %s1695_s8, %s668_s17  ;;  %p807_p4 = scmp.ne.s32.totalorder %s1700_s3, 0  ;;  %s816_s28 = smul.u32 10, %s1159_s19 }
 0x491   : > { %s676_s26 = sshll.u32 %s253_s29, 4  ;;  %s1194_s24 = smov [#allocation7]   ;;  %s1707_s26 = int_to_ptr.vmem [resolvable:$true] %s676_s26 }
 0x492   : > { %s672_s4 = sadd.s32 %s1155_s18, %s816_s28  ;;  %s1020_s30 = scalar_lea.vmem %s1707_s26, %s1700_s3 }
 0x493   : > { %s809_s23 = sshll.u32 %s672_s4, 7  ;;  %p1021_p6 = scmp.ne.s32.totalorder %s1707_s26, %s1020_s30 }
 0x494   : > { %s1712_s5 = scalar_lea.hbm %s1793_s2, %s809_s23  ;;  %s1024_s19 = sshll.u32 %s1194_s24, 4  ;;  %s1025_s19 = int_to_ptr.vmem [resolvable:$false] %s1024_s19 }
 0x495   : > { %p1022_p8 = pnand %p1021_p6, %p807_p4  ;;  %s1026_s18 = scalar_lea.vmem %s1025_s19, 1280 }
 0x496   : > { %p1027_p5 = scmp.lt.s32.totalorder %s1707_s26, %s1025_s19  ;;  %p1028_p9 = scmp.lt.s32.totalorder %s1026_s18, %s1020_s30 }
 0x497   : > { %p1023_p1 = pneg %p1022_p8 }
 0x498   : > { %p1029_p3 = por %p1028_p9, %p1027_p5 }
 0x49a   : > { %p1030_p11 = pnand %p1029_p3, %p1023_p1 }
 0x49c   : > { %1033 = shalt.err (!%p1030_p11)
}
 0x49d   : > { %s1034_s12 = scalar_lea.hbm %s1712_s5, %s1700_s3  ;;  %s1038_s29 = scalar_lea.hbm %s1793_s2, 2304 }
 0x49e   : > { %p1035_p7 = scmp.ne.s32.totalorder %s1712_s5, %s1034_s12  ;;  %p1039_p13 = scmp.lt.u32.totalorder %s1712_s5, %s1793_s2 }
 0x49f   : > { %p1040_p10 = scmp.lt.u32.totalorder %s1038_s29, %s1034_s12  ;;  %p1042_p6 = scmp.lt.u32.totalorder %s1034_s12, %s1712_s5 }
 0x4a0   : > { %p1036_p12 = pnand %p1035_p7, %p807_p4 }
 0x4a1   : > { %p1041_p2 = por %p1040_p10, %p1039_p13 }
 0x4a2   : > { %p1037_p0 = pneg %p1036_p12 }
 0x4a3   : > { %p1043_p8 = por %p1042_p6, %p1041_p2 }
 0x4a5   : > { %p1044_p1 = pnand %p1043_p8, %p1037_p0 }
 0x4a7   : > { %1047 = shalt.err (!%p1044_p1)
}
 0x4a8   : > { %s1195_s17 = smov 128   ;;  %s1196_s28 = smov 256  }
 0x4a9   : > { %s1197_s4 = smov 8  }
 0x4aa   : > { %682 = dma.vmem_to_hbm [thread:$0]  (%p807_p4), %s1707_s26, %s1700_s3, %s1712_s5, %s1695_s8, %s1195_s17, %s1196_s28, %s1197_s4  }
 0x4ab PF: > { %p829_p5 = scmp.ge.s32.totalorder %s1171_s22, 2  ;;  %s691_s23 = sand.u32 1, %s1119_s9  }
 0x4ac   : > { %p1829_p9 = scmp.ne.s32.totalorder %s1813_s20, 0  ;;  %s692_s6 = scalar_lea.sflag [#allocation4], %s691_s23 }
 0x4ae   : > { %p826_p3 = pnand %p829_p5, %p1829_p9 }
 0x4b0   : > { %1113 = dma.done.wait (!%p826_p3), %s692_s6, 640  }
 0x4b1   : > { %1115 = vsyncadd (!%p826_p3), %s692_s6, 4294966656  ;;  %s21_s22 = sadd.s32 1, %s1171_s22   ;;  %s1831_s8 = sld [smem:[#allocation17_spill]] }
 0x4b2   : > { %p1744_p11 = scmp.ge.s32.totalorder %s21_s22, 6   ;;  %s1832_s3 = sld [smem:[#allocation16_spill]] }
 0x4b3   : > { %s1833_s26 = sld [smem:[#allocation11_spill]]  ;;  %s1834_s17 = sld [smem:[#allocation15_spill]] }
 0x4b4   : > { %s1835_s18 = sld [smem:[#allocation12_spill]]  ;;  %s1836_s20 = sld [smem:[#allocation13_spill]] }
 0x4b5   : > { %s1837_s5 = sld [smem:[#allocation14_spill]]  ;;  %s1838_s9 = smov %s1123_s10 }
 0x4b6   : > { %s1839_s10 = smov %s1127_s11  ;;  %s1841_s12 = smov %s1135_s13 }
 0x4b7   : > { %s1840_s11 = smov %s1831_s8  ;;  %s1842_s13 = smov %s1139_s14 }
 0x4b8   : > { %s1843_s14 = smov %s1832_s3  ;;  %s1844_s15 = smov %s1147_s16 }
 0x4b9   : > { %s1845_s16 = smov %s1833_s26  ;;  %s1846_s19 = smov %s1167_s21 }
 0x4ba   :  { %20 = sbr.rel (!%p1744_p11) target bundleno = 14 (0xe), region = 86 }
 0x4bb   : > { %s1847_s21 = smov %s1837_s5 }
 0x4c1   :  { %697 = vsyncpa [#allocation3], 1 }
 0x4c2   :  { %699 = vsyncpa [#allocation3 + $0x1], 1 }
 0x4c3   :  { %700 = vsyncpa [#allocation6], 1 }
 0x4c4   :  { %702 = vsyncpa [#allocation6 + $0x1], 1 }
 0x4c5   :  { %703 = vsyncpa [#allocation4], 1 }
 0x4c6   :  { %705 = vsyncpa [#allocation4 + $0x1], 1 }

</bundles_post_ra>
